<compile_context>
chip_gen: v5e
topology: v5e:2x2
jax: 0.10.0
libtpu: 0.0.40
codegen_flags: <defaults>
</compile_context>

<pallas_src>
import jax
import jax.numpy as jnp
from jax import lax
from jax.experimental import pallas as pl
from jax.experimental.pallas import tpu as pltpu

NUM_CLASSES = 8
AUX_W, MAIN_W = 0.4, 1.0          # HRNet-style balance weights for the 2 seg outputs
EPS = 1e-10
HEADS_PAD = 24                    # 2*NUM_CLASSES + 1 = 17 fused head rows, padded to 8-multiple
MAX_TILE = 2048                   # pixel-tile cap (VMEM headroom on v7x's 64 MiB)


def _pick_tile(hw, cap=MAX_TILE):
    """Largest multiple of 128 that divides hw (lane-dense pixel tile)."""
    best = 0
    t = 128
    while t <= min(cap, hw):
        if hw % t == 0:
            best = t
        t += 128
    if best == 0:
        raise ValueError("H*W must be a multiple of 128")
    return best


def _masked_ce(logits, lab, valid):
    """Per-pixel softmax cross entropy over the class (sublane) axis, zeroed where invalid.

    logits: (K, TN) f32, lab/valid: (1, TN)."""
    m = jnp.max(logits, axis=0, keepdims=True)
    lse = m + jnp.log(jnp.sum(jnp.exp(logits - m), axis=0, keepdims=True))
    idx = lax.broadcasted_iota(jnp.int32, logits.shape, 0)
    picked = jnp.sum(jnp.where(idx == lab, logits, 0.0), axis=0, keepdims=True)
    return jnp.where(valid, lse - picked, 0.0)


def _first_argmax(logits, k):
    """argmax along the class axis, first occurrence on ties (torch.max convention)."""
    mx = jnp.max(logits, axis=0, keepdims=True)
    idx = lax.broadcasted_iota(jnp.int32, logits.shape, 0)
    return jnp.min(jnp.where(logits >= mx, idx, k), axis=0, keepdims=True)


def fullmodel_loss_kernel(x_ref, lab_ref, w_ref, b_ref,
                          oa_ref, om_ref, ps_ref, acc_ref):
    K = NUM_CLASSES
    ti = pl.program_id(1)

    @pl.when(ti == 0)
    def _():
        acc_ref[...] = jnp.zeros_like(acc_ref)

    x = x_ref[...].astype(jnp.float32)          # (C, TN)
    lab = lab_ref[...]                          # (1, TN) int32
    valid = lab >= 0

    # model forward: fused 1x1-conv heads == a single MXU matmul
    logits = jnp.dot(w_ref[...], x, preferred_element_type=jnp.float32) + b_ref[...]
    logits_a = logits[0:K]                      # (K, TN) aux-seg
    logits_m = logits[K:2 * K]                  # (K, TN) main-seg
    elogit = logits[2 * K:2 * K + 1]            # (1, TN) edge

    oa_ref[...] = logits_a                      # lane-dense, unmasked stores
    om_ref[...] = logits_m

    # seg cross-entropy (both outputs), masked by valid
    ce_a = _masked_ce(logits_a, lab, valid)
    ce_m = _masked_ce(logits_m, lab, valid)

    # pixel accuracy pieces (argmax of main output)
    preds = _first_argmax(logits_m, K)
    correct = jnp.where(valid & (preds == lab), 1.0, 0.0)

    # edge loss: BCE-with-logits vs. boundary target (label > 0), masked
    tgt = jnp.where(lab > 0, 1.0, 0.0)
    bce = jnp.maximum(elogit, 0.0) - elogit * tgt + jnp.log1p(jnp.exp(-jnp.abs(elogit)))
    bce = jnp.where(valid, bce, 0.0)

    # lane-wide running sums (one row per statistic); no per-step scalar reductions
    acc_ref[pl.ds(0, 1), :] += ce_a
    acc_ref[pl.ds(1, 1), :] += ce_m
    acc_ref[pl.ds(2, 1), :] += valid.astype(jnp.float32)
    acc_ref[pl.ds(3, 1), :] += correct
    acc_ref[pl.ds(4, 1), :] += bce

    @pl.when(ti == pl.num_programs(1) - 1)
    def _():
        # single cross-lane reduction per batch -> per-batch partial sums
        ps_ref[...] = jnp.sum(acc_ref[...], axis=1, keepdims=True)   # (8, 1)


@jax.jit
def full_model_loss(x_nchw, labels, w_aux, w_main, w_edge, b_aux, b_main, b_edge):
    B, C, H, W = x_nchw.shape
    K = NUM_CLASSES
    HW = H * W
    TN = _pick_tile(HW)
    T = HW // TN

    # NCHW-native layouts: pure reshapes, no HBM transposes
    x = x_nchw.reshape(B, C, HW).astype(jnp.float32)
    lab = labels.reshape(B, 1, HW).astype(jnp.int32)

    # fuse the three 1x1-conv heads into one padded weight/bias slab
    pad = HEADS_PAD - (2 * K + 1)
    w_fused = jnp.concatenate(
        [w_aux.T, w_main.T, w_edge.T, jnp.zeros((pad, C), jnp.float32)], axis=0)
    b_fused = jnp.concatenate(
        [b_aux.reshape(K, 1), b_main.reshape(K, 1), b_edge.reshape(1, 1),
         jnp.zeros((pad, 1), jnp.float32)], axis=0)

    out_shapes = (
        jax.ShapeDtypeStruct((B, K, HW), jnp.float32),   # aux logits (NCHW, flat spatial)
        jax.ShapeDtypeStruct((B, K, HW), jnp.float32),   # main logits (NCHW, flat spatial)
        jax.ShapeDtypeStruct((B, 8, 1), jnp.float32),    # per-batch partial sums
    )

    tile = lambda b, t: (b, 0, t)
    rep = lambda b, t: (0, 0)
    in_specs = [
        pl.BlockSpec((None, C, TN), tile),              # x
        pl.BlockSpec((None, 1, TN), tile),              # labels (lane-dense)
        pl.BlockSpec((HEADS_PAD, C), rep),              # fused head weights
        pl.BlockSpec((HEADS_PAD, 1), rep),              # fused head biases
    ]
    out_specs = (
        pl.BlockSpec((None, K, TN), tile),
        pl.BlockSpec((None, K, TN), tile),
        pl.BlockSpec((None, 8, 1), lambda b, t: (b, 0, 0)),
    )

    oa, om, psums = pl.pallas_call(
        fullmodel_loss_kernel,
        out_shape=out_shapes,
        grid_spec=pltpu.PrefetchScalarGridSpec(
            num_scalar_prefetch=0,
            grid=(B, T),
            in_specs=in_specs,
            out_specs=out_specs,
            scratch_shapes=[pltpu.VMEM((8, TN), jnp.float32)],
        ),
        compiler_params=pltpu.CompilerParams(
            dimension_semantics=("parallel", "arbitrary")),
    )(x, lab, w_fused, b_fused)

    aux_nchw = oa.reshape(B, K, H, W)
    main_nchw = om.reshape(B, K, H, W)

    # tiny final combine in plain JAX (keeps kernel megacore-safe)
    tot = jnp.sum(psums, axis=0).reshape(8)
    n_valid = tot[2] + EPS
    loss = AUX_W * (tot[0] / n_valid) + MAIN_W * (tot[1] / n_valid)
    acc = tot[3] / n_valid
    eloss = tot[4] / n_valid
    # matches: (torch.unsqueeze(loss, 0), outputs, acc, eloss)
    return loss.reshape(1), (aux_nchw, main_nchw), acc, eloss


if __name__ == "__main__":
    key = jax.random.PRNGKey(0)
    kx, kl, k1, k2, k3, k4, k5, k6 = jax.random.split(key, 8)

    B, C, H, W = 2, 32, 16, 16
    x = jax.random.normal(kx, (B, C, H, W), dtype=jnp.float32)
    labels = jax.random.randint(kl, (B, H, W), 0, NUM_CLASSES, dtype=jnp.int32)

    # deterministic synthetic "model" parameters (three 1x1-conv heads)
    w_aux = 0.1 * jax.random.normal(k1, (C, NUM_CLASSES), dtype=jnp.float32)
    w_main = 0.1 * jax.random.normal(k2, (C, NUM_CLASSES), dtype=jnp.float32)
    w_edge = 0.1 * jax.random.normal(k3, (C, 1), dtype=jnp.float32)
    b_aux = 0.01 * jax.random.normal(k4, (1, NUM_CLASSES), dtype=jnp.float32)
    b_main = 0.01 * jax.random.normal(k5, (1, NUM_CLASSES), dtype=jnp.float32)
    b_edge = 0.01 * jax.random.normal(k6, (1, 1), dtype=jnp.float32)

    loss, (aux_out, main_out), acc, eloss = full_model_loss(
        x, labels, w_aux, w_main, w_edge, b_aux, b_main, b_edge)
    jax.block_until_ready((loss, aux_out, main_out, acc, eloss))

    assert loss.shape == (1,)
    assert aux_out.shape == (B, NUM_CLASSES, H, W)
    assert main_out.shape == (B, NUM_CLASSES, H, W)
    assert acc.shape == () and eloss.shape == ()
    # TODO(synk): the wrapped model/loss/edge_loss are abstract in the PyTorch
    # module; concrete choices (1x1-conv heads, weighted CE, BCE edge loss)
    # are documented at the top of this file.
    print("KERNEL_OK")
</pallas_src>

<mosaic_0001>
module attributes {stable_mosaic.version = 11 : i64} {
  func.func @fullmodel_loss_kernel(%arg0: i32, %arg1: i32, %arg2: memref<1x32x256xf32, #tpu.memory_space<vmem>>, %arg3: memref<1x1x256xi32, #tpu.memory_space<vmem>>, %arg4: memref<24x32xf32, #tpu.memory_space<vmem>>, %arg5: memref<24x1xf32, #tpu.memory_space<vmem>>, %arg6: memref<1x8x256xf32, #tpu.memory_space<vmem>>, %arg7: memref<1x8x256xf32, #tpu.memory_space<vmem>>, %arg8: memref<1x8x1xf32, #tpu.memory_space<vmem>>, %arg9: memref<8x256xf32, #tpu.memory_space<vmem>>) attributes {dimension_semantics = [#tpu.dimension_semantics<parallel>, #tpu.dimension_semantics<arbitrary>], iteration_bounds = array<i64: 2, 1>, scalar_prefetch = 0 : i64, scratch_operands = 1 : i64, tpu.core_type = #tpu.core_type<tc>, window_params = [{transform_indices = @transform_0, window_bounds = array<i64: 1, 32, 256>}, {transform_indices = @transform_1, window_bounds = array<i64: 1, 1, 256>}, {pipeline_mode = #tpu.pipeline_mode<synchronous>, transform_indices = @transform_2, window_bounds = array<i64: 24, 32>}, {pipeline_mode = #tpu.pipeline_mode<synchronous>, transform_indices = @transform_3, window_bounds = array<i64: 24, 1>}, {transform_indices = @transform_4, window_bounds = array<i64: 1, 8, 256>}, {transform_indices = @transform_5, window_bounds = array<i64: 1, 8, 256>}, {transform_indices = @transform_6, window_bounds = array<i64: 1, 8, 1>}]} {
    %c0_i32 = arith.constant 0 : i32
    %0 = arith.cmpi eq, %arg1, %c0_i32 : i32
    %1 = arith.extui %0 : i1 to i32
    %c0_i32_0 = arith.constant 0 : i32
    %2 = arith.cmpi ne, %1, %c0_i32_0 : i32
    scf.if %2 {
      %cst_55 = arith.constant 0.000000e+00 : f32
      %112 = vector.broadcast %cst_55 : f32 to vector<8x256xf32>
      %c0_56 = arith.constant 0 : index
      %c0_57 = arith.constant 0 : index
      %113 = vector.load %arg9[%c0_56, %c0_57] : memref<8x256xf32, #tpu.memory_space<vmem>>, vector<8x256xf32>
      tpu.vector_store %arg9[%c0_56, %c0_57], %112 {strides = array<i32>} : memref<8x256xf32, #tpu.memory_space<vmem>>, vector<8x256xf32>,
    } else {
    }
    %c0 = arith.constant 0 : index
    %c0_1 = arith.constant 0 : index
    %c0_2 = arith.constant 0 : index
    %3 = vector.load %arg2[%c0, %c0_1, %c0_2] : memref<1x32x256xf32, #tpu.memory_space<vmem>>, vector<1x32x256xf32>
    %4 = vector.shape_cast %3 : vector<1x32x256xf32> to vector<32x256xf32>
    %c0_3 = arith.constant 0 : index
    %c0_4 = arith.constant 0 : index
    %c0_5 = arith.constant 0 : index
    %5 = vector.load %arg3[%c0_3, %c0_4, %c0_5] : memref<1x1x256xi32, #tpu.memory_space<vmem>>, vector<1x1x256xi32>
    %6 = vector.shape_cast %5 : vector<1x1x256xi32> to vector<1x256xi32>
    %c0_i32_6 = arith.constant 0 : i32
    %7 = vector.broadcast %c0_i32_6 : i32 to vector<1x256xi32>
    %8 = arith.cmpi sge, %6, %7 : vector<1x256xi32>
    %c0_7 = arith.constant 0 : index
    %c0_8 = arith.constant 0 : index
    %9 = vector.load %arg4[%c0_7, %c0_8] : memref<24x32xf32, #tpu.memory_space<vmem>>, vector<24x32xf32>
    %cst = arith.constant dense<0.000000e+00> : vector<24x256xf32>
    %10 = tpu.matmul %9, %4, %cst {dimension_numbers = #tpu.dot_dimension_numbers<[1], [0], [0], [1], [0, 0, 1, 1], [], []>} : vector<24x32xf32>, vector<32x256xf32>, vector<24x256xf32> -> vector<24x256xf32>
    %c0_9 = arith.constant 0 : index
    %c0_10 = arith.constant 0 : index
    %11 = vector.load %arg5[%c0_9, %c0_10] : memref<24x1xf32, #tpu.memory_space<vmem>>, vector<24x1xf32>
    %12 = vector.broadcast %11 : vector<24x1xf32> to vector<24x256xf32>
    %13 = arith.addf %10, %12 : vector<24x256xf32>
    %14 = vector.extract_strided_slice %13 {offsets = [0, 0], sizes = [8, 256], strides = [1, 1]} : vector<24x256xf32> to vector<8x256xf32>
    %15 = vector.extract_strided_slice %13 {offsets = [8, 0], sizes = [8, 256], strides = [1, 1]} : vector<24x256xf32> to vector<8x256xf32>
    %16 = vector.extract_strided_slice %13 {offsets = [16, 0], sizes = [1, 256], strides = [1, 1]} : vector<24x256xf32> to vector<1x256xf32>
    %c0_11 = arith.constant 0 : index
    %c0_12 = arith.constant 0 : index
    %c0_13 = arith.constant 0 : index
    %17 = vector.load %arg6[%c0_11, %c0_12, %c0_13] : memref<1x8x256xf32, #tpu.memory_space<vmem>>, vector<1x8x256xf32>
    %18 = vector.shape_cast %17 : vector<1x8x256xf32> to vector<8x256xf32>
    %19 = vector.shape_cast %14 : vector<8x256xf32> to vector<1x8x256xf32>
    tpu.vector_store %arg6[%c0_11, %c0_12, %c0_13], %19 {strides = array<i32>} : memref<1x8x256xf32, #tpu.memory_space<vmem>>, vector<1x8x256xf32>,
    %c0_14 = arith.constant 0 : index
    %c0_15 = arith.constant 0 : index
    %c0_16 = arith.constant 0 : index
    %20 = vector.load %arg7[%c0_14, %c0_15, %c0_16] : memref<1x8x256xf32, #tpu.memory_space<vmem>>, vector<1x8x256xf32>
    %21 = vector.shape_cast %20 : vector<1x8x256xf32> to vector<8x256xf32>
    %22 = vector.shape_cast %15 : vector<8x256xf32> to vector<1x8x256xf32>
    tpu.vector_store %arg7[%c0_14, %c0_15, %c0_16], %22 {strides = array<i32>} : memref<1x8x256xf32, #tpu.memory_space<vmem>>, vector<1x8x256xf32>,
    %cst_17 = arith.constant dense<0xFF800000> : vector<256xf32>
    %23 = vector.multi_reduction <maximumf>, %14, %cst_17 [0] : vector<8x256xf32> to vector<256xf32>
    %24 = vector.shape_cast %23 : vector<256xf32> to vector<1x256xf32>
    %25 = vector.broadcast %24 : vector<1x256xf32> to vector<8x256xf32>
    %26 = arith.subf %14, %25 : vector<8x256xf32>
    %27 = math.exp %26 : vector<8x256xf32>
    %cst_18 = arith.constant dense<0.000000e+00> : vector<256xf32>
    %28 = vector.multi_reduction <add>, %27, %cst_18 [0] : vector<8x256xf32> to vector<256xf32>
    %29 = vector.shape_cast %28 : vector<256xf32> to vector<1x256xf32>
    %30 = math.log %29 : vector<1x256xf32>
    %31 = arith.addf %24, %30 : vector<1x256xf32>
    %32 = tpu.iota {dimensions = array<i32: 0>} : vector<8x256xi32>
    %33 = vector.broadcast %6 : vector<1x256xi32> to vector<8x256xi32>
    %34 = arith.cmpi eq, %32, %33 : vector<8x256xi32>
    %cst_19 = arith.constant 0.000000e+00 : f32
    %35 = vector.broadcast %cst_19 : f32 to vector<8x256xf32>
    %36 = arith.select %34, %14, %35 : vector<8x256xi1>, vector<8x256xf32>
    %cst_20 = arith.constant dense<0.000000e+00> : vector<256xf32>
    %37 = vector.multi_reduction <add>, %36, %cst_20 [0] : vector<8x256xf32> to vector<256xf32>
    %38 = vector.shape_cast %37 : vector<256xf32> to vector<1x256xf32>
    %39 = arith.subf %31, %38 : vector<1x256xf32>
    %cst_21 = arith.constant 0.000000e+00 : f32
    %40 = vector.broadcast %cst_21 : f32 to vector<1x256xf32>
    %41 = arith.select %8, %39, %40 : vector<1x256xi1>, vector<1x256xf32>
    %cst_22 = arith.constant dense<0xFF800000> : vector<256xf32>
    %42 = vector.multi_reduction <maximumf>, %15, %cst_22 [0] : vector<8x256xf32> to vector<256xf32>
    %43 = vector.shape_cast %42 : vector<256xf32> to vector<1x256xf32>
    %44 = vector.broadcast %43 : vector<1x256xf32> to vector<8x256xf32>
    %45 = arith.subf %15, %44 : vector<8x256xf32>
    %46 = math.exp %45 : vector<8x256xf32>
    %cst_23 = arith.constant dense<0.000000e+00> : vector<256xf32>
    %47 = vector.multi_reduction <add>, %46, %cst_23 [0] : vector<8x256xf32> to vector<256xf32>
    %48 = vector.shape_cast %47 : vector<256xf32> to vector<1x256xf32>
    %49 = math.log %48 : vector<1x256xf32>
    %50 = arith.addf %43, %49 : vector<1x256xf32>
    %51 = tpu.iota {dimensions = array<i32: 0>} : vector<8x256xi32>
    %52 = vector.broadcast %6 : vector<1x256xi32> to vector<8x256xi32>
    %53 = arith.cmpi eq, %51, %52 : vector<8x256xi32>
    %cst_24 = arith.constant 0.000000e+00 : f32
    %54 = vector.broadcast %cst_24 : f32 to vector<8x256xf32>
    %55 = arith.select %53, %15, %54 : vector<8x256xi1>, vector<8x256xf32>
    %cst_25 = arith.constant dense<0.000000e+00> : vector<256xf32>
    %56 = vector.multi_reduction <add>, %55, %cst_25 [0] : vector<8x256xf32> to vector<256xf32>
    %57 = vector.shape_cast %56 : vector<256xf32> to vector<1x256xf32>
    %58 = arith.subf %50, %57 : vector<1x256xf32>
    %cst_26 = arith.constant 0.000000e+00 : f32
    %59 = vector.broadcast %cst_26 : f32 to vector<1x256xf32>
    %60 = arith.select %8, %58, %59 : vector<1x256xi1>, vector<1x256xf32>
    %cst_27 = arith.constant dense<0xFF800000> : vector<256xf32>
    %61 = vector.multi_reduction <maximumf>, %15, %cst_27 [0] : vector<8x256xf32> to vector<256xf32>
    %62 = vector.shape_cast %61 : vector<256xf32> to vector<1x256xf32>
    %63 = tpu.iota {dimensions = array<i32: 0>} : vector<8x256xi32>
    %64 = vector.broadcast %62 : vector<1x256xf32> to vector<8x256xf32>
    %65 = arith.cmpf oge, %15, %64 : vector<8x256xf32>
    %c8_i32 = arith.constant 8 : i32
    %66 = vector.broadcast %c8_i32 : i32 to vector<8x256xi32>
    %67 = arith.select %65, %63, %66 : vector<8x256xi1>, vector<8x256xi32>
    %cst_28 = arith.constant dense<2147483647> : vector<256xi32>
    %68 = vector.multi_reduction <minsi>, %67, %cst_28 [0] : vector<8x256xi32> to vector<256xi32>
    %69 = vector.shape_cast %68 : vector<256xi32> to vector<1x256xi32>
    %70 = arith.cmpi eq, %69, %6 : vector<1x256xi32>
    %71 = arith.andi %8, %70 : vector<1x256xi1>
    %cst_29 = arith.constant 1.000000e+00 : f32
    %cst_30 = arith.constant 0.000000e+00 : f32
    %72 = vector.broadcast %cst_29 : f32 to vector<1x256xf32>
    %73 = vector.broadcast %cst_30 : f32 to vector<1x256xf32>
    %74 = arith.select %71, %72, %73 : vector<1x256xi1>, vector<1x256xf32>
    %c0_i32_31 = arith.constant 0 : i32
    %75 = vector.broadcast %c0_i32_31 : i32 to vector<1x256xi32>
    %76 = arith.cmpi sgt, %6, %75 : vector<1x256xi32>
    %cst_32 = arith.constant 1.000000e+00 : f32
    %cst_33 = arith.constant 0.000000e+00 : f32
    %77 = vector.broadcast %cst_32 : f32 to vector<1x256xf32>
    %78 = vector.broadcast %cst_33 : f32 to vector<1x256xf32>
    %79 = arith.select %76, %77, %78 : vector<1x256xi1>, vector<1x256xf32>
    %cst_34 = arith.constant 0.000000e+00 : f32
    %80 = vector.broadcast %cst_34 : f32 to vector<1x256xf32>
    %81 = arith.maximumf %16, %80 : vector<1x256xf32>
    %82 = arith.mulf %16, %79 : vector<1x256xf32>
    %83 = arith.subf %81, %82 : vector<1x256xf32>
    %84 = math.absf %16 : vector<1x256xf32>
    %cst_35 = arith.constant 0.000000e+00 : f32
    %85 = vector.broadcast %cst_35 : f32 to vector<1x256xf32>
    %86 = arith.subf %85, %84 : vector<1x256xf32>
    %87 = math.exp %86 : vector<1x256xf32>
    %88 = math.log1p %87 : vector<1x256xf32>
    %89 = arith.addf %83, %88 : vector<1x256xf32>
    %cst_36 = arith.constant 0.000000e+00 : f32
    %90 = vector.broadcast %cst_36 : f32 to vector<1x256xf32>
    %91 = arith.select %8, %89, %90 : vector<1x256xi1>, vector<1x256xf32>
    %c0_37 = arith.constant 0 : index
    %c0_38 = arith.constant 0 : index
    %92 = vector.load %arg9[%c0_37, %c0_38] : memref<8x256xf32, #tpu.memory_space<vmem>>, vector<1x256xf32>
    %93 = arith.addf %92, %41 : vector<1x256xf32>
    %c0_39 = arith.constant 0 : index
    %c0_40 = arith.constant 0 : index
    %94 = vector.load %arg9[%c0_39, %c0_40] : memref<8x256xf32, #tpu.memory_space<vmem>>, vector<1x256xf32>
    tpu.vector_store %arg9[%c0_39, %c0_40], %93 {strides = array<i32>} : memref<8x256xf32, #tpu.memory_space<vmem>>, vector<1x256xf32>,
    %c1 = arith.constant 1 : index
    %c0_41 = arith.constant 0 : index
    %95 = vector.load %arg9[%c1, %c0_41] : memref<8x256xf32, #tpu.memory_space<vmem>>, vector<1x256xf32>
    %96 = arith.addf %95, %60 : vector<1x256xf32>
    %c1_42 = arith.constant 1 : index
    %c0_43 = arith.constant 0 : index
    %97 = vector.load %arg9[%c1_42, %c0_43] : memref<8x256xf32, #tpu.memory_space<vmem>>, vector<1x256xf32>
    tpu.vector_store %arg9[%c1_42, %c0_43], %96 {strides = array<i32>} : memref<8x256xf32, #tpu.memory_space<vmem>>, vector<1x256xf32>,
    %c2 = arith.constant 2 : index
    %c0_44 = arith.constant 0 : index
    %98 = vector.load %arg9[%c2, %c0_44] : memref<8x256xf32, #tpu.memory_space<vmem>>, vector<1x256xf32>
    %99 = arith.extui %8 : vector<1x256xi1> to vector<1x256xi32>
    %100 = arith.sitofp %99 : vector<1x256xi32> to vector<1x256xf32>
    %101 = arith.addf %98, %100 : vector<1x256xf32>
    %c2_45 = arith.constant 2 : index
    %c0_46 = arith.constant 0 : index
    %102 = vector.load %arg9[%c2_45, %c0_46] : memref<8x256xf32, #tpu.memory_space<vmem>>, vector<1x256xf32>
    tpu.vector_store %arg9[%c2_45, %c0_46], %101 {strides = array<i32>} : memref<8x256xf32, #tpu.memory_space<vmem>>, vector<1x256xf32>,
    %c3 = arith.constant 3 : index
    %c0_47 = arith.constant 0 : index
    %103 = vector.load %arg9[%c3, %c0_47] : memref<8x256xf32, #tpu.memory_space<vmem>>, vector<1x256xf32>
    %104 = arith.addf %103, %74 : vector<1x256xf32>
    %c3_48 = arith.constant 3 : index
    %c0_49 = arith.constant 0 : index
    %105 = vector.load %arg9[%c3_48, %c0_49] : memref<8x256xf32, #tpu.memory_space<vmem>>, vector<1x256xf32>
    tpu.vector_store %arg9[%c3_48, %c0_49], %104 {strides = array<i32>} : memref<8x256xf32, #tpu.memory_space<vmem>>, vector<1x256xf32>,
    %c4 = arith.constant 4 : index
    %c0_50 = arith.constant 0 : index
    %106 = vector.load %arg9[%c4, %c0_50] : memref<8x256xf32, #tpu.memory_space<vmem>>, vector<1x256xf32>
    %107 = arith.addf %106, %91 : vector<1x256xf32>
    %c4_51 = arith.constant 4 : index
    %c0_52 = arith.constant 0 : index
    %108 = vector.load %arg9[%c4_51, %c0_52] : memref<8x256xf32, #tpu.memory_space<vmem>>, vector<1x256xf32>
    tpu.vector_store %arg9[%c4_51, %c0_52], %107 {strides = array<i32>} : memref<8x256xf32, #tpu.memory_space<vmem>>, vector<1x256xf32>,
    %c0_i32_53 = arith.constant 0 : i32
    %109 = arith.cmpi eq, %arg1, %c0_i32_53 : i32
    %110 = arith.extui %109 : i1 to i32
    %c0_i32_54 = arith.constant 0 : i32
    %111 = arith.cmpi ne, %110, %c0_i32_54 : i32
    scf.if %111 {
      %c0_55 = arith.constant 0 : index
      %c0_56 = arith.constant 0 : index
      %112 = vector.load %arg9[%c0_55, %c0_56] : memref<8x256xf32, #tpu.memory_space<vmem>>, vector<8x256xf32>
      %cst_57 = arith.constant dense<0.000000e+00> : vector<8xf32>
      %113 = vector.multi_reduction <add>, %112, %cst_57 [1] : vector<8x256xf32> to vector<8xf32>
      %114 = vector.shape_cast %113 : vector<8xf32> to vector<8x1xf32>
      %c0_58 = arith.constant 0 : index
      %c0_59 = arith.constant 0 : index
      %c0_60 = arith.constant 0 : index
      %115 = vector.load %arg8[%c0_58, %c0_59, %c0_60] : memref<1x8x1xf32, #tpu.memory_space<vmem>>, vector<1x8x1xf32>
      %116 = vector.shape_cast %115 : vector<1x8x1xf32> to vector<8x1xf32>
      %117 = vector.shape_cast %114 : vector<8x1xf32> to vector<1x8x1xf32>
      tpu.vector_store %arg8[%c0_58, %c0_59, %c0_60], %117 {strides = array<i32>} : memref<1x8x1xf32, #tpu.memory_space<vmem>>, vector<1x8x1xf32>,
    } else {
    }
    return
  }
  func.func @transform_0(%arg0: i32, %arg1: i32) -> (i32, i32, i32) {
    %c0_i32 = arith.constant 0 : i32
    %c0_i32_0 = arith.constant 0 : i32
    return %arg0, %c0_i32, %arg1 : i32, i32, i32
  }
  func.func @transform_1(%arg0: i32, %arg1: i32) -> (i32, i32, i32) {
    %c0_i32 = arith.constant 0 : i32
    %c0_i32_0 = arith.constant 0 : i32
    return %arg0, %c0_i32, %arg1 : i32, i32, i32
  }
  func.func @transform_2(%arg0: i32, %arg1: i32) -> (i32, i32) {
    %c0_i32 = arith.constant 0 : i32
    %c0_i32_0 = arith.constant 0 : i32
    %c0_i32_1 = arith.constant 0 : i32
    return %c0_i32, %c0_i32_0 : i32, i32
  }
  func.func @transform_3(%arg0: i32, %arg1: i32) -> (i32, i32) {
    %c0_i32 = arith.constant 0 : i32
    %c0_i32_0 = arith.constant 0 : i32
    %c0_i32_1 = arith.constant 0 : i32
    return %c0_i32, %c0_i32_0 : i32, i32
  }
  func.func @transform_4(%arg0: i32, %arg1: i32) -> (i32, i32, i32) {
    %c0_i32 = arith.constant 0 : i32
    %c0_i32_0 = arith.constant 0 : i32
    return %arg0, %c0_i32, %arg1 : i32, i32, i32
  }
  func.func @transform_5(%arg0: i32, %arg1: i32) -> (i32, i32, i32) {
    %c0_i32 = arith.constant 0 : i32
    %c0_i32_0 = arith.constant 0 : i32
    return %arg0, %c0_i32, %arg1 : i32, i32, i32
  }
  func.func @transform_6(%arg0: i32, %arg1: i32) -> (i32, i32, i32) {
    %c0_i32 = arith.constant 0 : i32
    %c0_i32_0 = arith.constant 0 : i32
    %c0_i32_1 = arith.constant 0 : i32
    return %arg0, %c0_i32, %c0_i32_0 : i32, i32, i32
  }
}

</mosaic_0001>

<bundles_post_ra>
// kernel: full_model_loss.1
= control target key start
LH: loop header
LB: loop body
LE: loop exit
PB: predicated region body
PF: predicated region fallthrough
CT: control target
= control target key end

     0   :  { %s1031_s21 = smov 0   ;;  %s1033_s22 = smov 0   ;;  %s1222_s0 = inlined_call_operand.vmem [shape: f32[2,32,256], index: 0, kind: input, shape index: {}]   ;;  %s1223_s1 = inlined_call_operand.vmem [shape: s32[2,1,256], index: 1, kind: input, shape index: {}]   ;;  %s1224_s2 = inlined_call_operand.vmem [shape: f32[24,32], index: 2, kind: input, shape index: {}]   ;;  %s1225_s3 = inlined_call_operand.vmem [shape: f32[24,1], index: 3, kind: input, shape index: {}]   ;;  %s1226_s4 = inlined_call_operand.vmem [shape: f32[2,8,256], index: 4, kind: output, shape index: {0}]   ;;  %s1227_s5 = inlined_call_operand.vmem [shape: f32[2,8,256], index: 5, kind: output, shape index: {1}]   ;;  %s1228_s6 = inlined_call_operand.vmem [shape: f32[2,8,1], index: 6, kind: output, shape index: {2}]  }
   0x1   :  { %s1035_s23 = smov 0  }
   0x2 LB: > { %s29_s24 = sadd.s32 1, %s988_s22  ;;  %p889_p0 = scmp.ge.s32.totalorder %s992_s23, 1  ;;  %s992_s23 = sphi %s1035_s23, %s17_s23   ;;  %s988_s22 = sphi %s1033_s22, %s1238_s22   ;;  %s984_s21 = sphi %s1031_s21, %s1237_s21  }
   0x3   : > { %p31_p1 = scmp.ge.s32.totalorder %s29_s24, 2  ;;  %p256_p2 = scmp.lt.s32.totalorder %s992_s23, 3 }
   0x5   : > { %s1240_s24 = smov (%p31_p1, %s29_s24), 0  ;;  %p257_p3 = pnand %p889_p0, %p256_p2 }
   0x6   : > { %p316_p4 = scmp.lt.s32.totalorder (!%p257_p3), %s984_s21, 1 }
   0x7   : > { %260 = sbr.rel (%p257_p3) target bundleno = 343 (0x157), region = 36 }
   0xc   : > { %v377_v0 = vld [vmem:[%s1225_s3] sm:$0xff]  ;;  %v994_v1 = vmov 0   ;;  %v379_v2 = vld [vmem:[%s1225_s3 + $0x10] sm:$0xff]  ;;  %s1242_s21 = smov (!%p316_p4, %s984_s21), 1  ;;  %vm395_vm0 = vcmask 261120   ;;  %v375_v12 = vld [vmem:[%s1224_s2 + $0x8] sm:$0xff]  ;;  %v497_v16 = vlaneseq }
   0xd   : > { %944 = vset.pattern.permute.xlu0 %v994_v1  ;;  %945 = vset.pattern.permute.xlu1 %v994_v1  ;;  %s907_s29 = sshll.u32 %s1242_s21, 6  ;;  %v374_v11 = vld [vmem:[%s1224_s2] sm:$0xff]  ;;  %v378_v13 = vld [vmem:[%s1225_s3 + $0x8] sm:$0xff]  ;;  %v376_v14 = vld [vmem:[%s1224_s2 + $0x10] sm:$0xff]  ;;  %s892_s17 = sshll.u32 %s1242_s21, 1  ;;  %v995_v19 = vmov 0.0  }
   0xe   : > { %382 = vperm.xlu0 %944, %v377_v0   ;;  %392 = vperm.xlu1 %945, %v379_v2   ;;  %s323_s8 = scalar_lea.vmem %s1222_s0, %s907_s29  ;;  %s332_s20 = scalar_lea.vmem %s1223_s1, %s892_s17  ;;  %362 = vst [vmem:[#allocation2] sm:$0xff] %v995_v19  ;;  %v1088_v24 = vshrl.u32 %v497_v16, 7  ;;  %vm1143_vm8 = vcmp.lt.s32.totalorder %v497_v16, 256  ;;  %vm522_vm15 = vcmask 1040384  }
   0xf   : > { %v370_v3 = vld [vmem:[%s323_s8 + $0x30] sm:$0xff]  ;;  %v371_v4 = vld [vmem:[%s323_s8 + $0x38] sm:$0xff]  ;;  %v368_v5 = vld [vmem:[%s323_s8 + $0x20] sm:$0xff]  ;;  %s908_s25 = sshll.u32 %s1242_s21, 4  ;;  %363 = vst [vmem:[#allocation2 + $0x8] sm:$0xff] %v995_v19 }
  0x10   : > { %417 = vmatpush.msra.mxu0 %v370_v3  ;;  %910 = vmatpush.msra.mxu2 %v370_v3  ;;  %v369_v6 = vld [vmem:[%s323_s8 + $0x28] sm:$0xff]  ;;  %v366_v7 = vld [vmem:[%s323_s8 + $0x10] sm:$0xff]  ;;  %v367_v8 = vld [vmem:[%s323_s8 + $0x18] sm:$0xff]  ;;  %s342_s28 = scalar_lea.vmem %s1226_s4, %s908_s25  ;;  %s352_s7 = scalar_lea.vmem %s1227_s5, %s908_s25 }
  0x11   : > { %443 = vmatpush.msra.mxu1 %v371_v4  ;;  %914 = vmatpush.msra.mxu3 %v371_v4  ;;  %v364_v9 = vld [vmem:[%s323_s8] sm:$0xff]  ;;  %v365_v10 = vld [vmem:[%s323_s8 + $0x8] sm:$0xff]  ;;  %s897_s8 = sshll.u32 %s1242_s21, 3 }
  0x12   : > { %418 = vmatpush.msra.mxu0 %v368_v5  ;;  %911 = vmatpush.msra.mxu2 %v368_v5  ;;  %v1083_v17 = vld [vmem:[%s332_s20] sm:$0x3]  ;;  %s357_s11 = scalar_lea.vmem %s1228_s6, %s897_s8 }
  0x13   : > { %444 = vmatpush.msra.mxu1 %v369_v6  ;;  %915 = vmatpush.msra.mxu3 %v369_v6  ;;  %v499_v25 = vperm.slane %v1083_v17, 0  ;;  %v500_v28 = vperm.slane %v1083_v17, 1  ;;  %vm373_vm3 = vcmp.ge.s32.totalorder %v1083_v17, 0  ;;  %vm615_vm11 = vcmp.gt.s32.totalorder %v1083_v17, 0 }
  0x14   : > { %419 = vmatpush.msra.mxu0 %v366_v7  ;;  %912 = vmatpush.msra.mxu2 %v366_v7 }
  0x15   : > { %445 = vmatpush.msra.mxu1 %v367_v8  ;;  %916 = vmatpush.msra.mxu3 %v367_v8  ;;  %vm1098_vm1 = vcmp.eq.s32.totalorder %v1088_v24, %v499_v25  ;;  %vm1105_vm2 = vcmp.eq.s32.totalorder %v1088_v24, %v500_v28 }
  0x16   : > { %420 = vmatpush.msra.mxu0 %v364_v9  ;;  %913 = vmatpush.msra.mxu2 %v364_v9 }
  0x17   : > { %446 = vmatpush.msra.mxu1 %v365_v10  ;;  %917 = vmatpush.msra.mxu3 %v365_v10 }
  0x18   : > { %898 = vmatmul.msk.f32.vlgmr.msra.gmra.mxu0 %vm395_vm0, %v374_v11  ;;  %899 = vmatmul.msk.f32.vlgmr.msra.gmra.mxu2 %vm395_vm0, %v375_v12 }
  0x19   : > { %901 = vmatmul.msk.f32.vlgmr.msra.gmra.mxu1 %vm395_vm0, %v374_v11  ;;  %902 = vmatmul.msk.f32.vlgmr.msra.gmra.mxu3 %vm395_vm0, %v375_v12 }
  0x1a   : > { %387 = vperm.xlu0 %944, %v378_v13  }
  0x20   : > { %900 = vmatmul.msk.f32.gmra.mxu2 %vm395_vm0, %v376_v14 }
  0x21   : > { %903 = vmatmul.msk.f32.gmra.mxu3 %vm395_vm0, %v376_v14 }
  0x80   : > { %v383_v15 = vpop.permute.xlu0 %382  ;;  %v393_v52 = vpop.permute.xlu1 %392 }
  0x8c   : > { %v388_v29 = vpop.permute.xlu0 %387 }
  0x95   : > { %v422_v18 = vpop.f32.mrf.mxu0 }
  0x96   : > { %v423_v20 = vadd.f32 %v422_v18, %v383_v15  ;;  %v448_v21 = vpop.f32.mrf.mxu1 }
  0x97   : > { %v449_v22 = vadd.f32 %v448_v21, %v383_v15 }
  0x98   : > { %457 = vst [vmem:[%s342_s28] sm:$0xff] %v423_v20  ;;  %v461_v23 = vrot.slane %v423_v20, 4  ;;  %v503_v41 = vsel %vm1098_vm1, %v423_v20, 0.0 }
  0x99   : > { %458 = vst [vmem:[%s342_s28 + $0x8] sm:$0xff] %v449_v22  ;;  %v467_v26 = vrot.slane %v449_v22, 4  ;;  %v504_v47 = vsel %vm1105_vm2, %v449_v22, 0.0  ;;  %v505_v50 = vrot.slane %v503_v41, 4 }
  0x9a   : > { %v462_v27 = vmax.f32 %v423_v20, %v461_v23  ;;  %v511_v57 = vrot.slane %v504_v47, 4 }
  0x9b   : > { %v468_v30 = vmax.f32 %v449_v22, %v467_v26  ;;  %v425_v31 = vpop.f32.mrf.mxu2  ;;  %v506_v63 = vadd.f32 %v505_v50, %v503_v41  ;;  %v904_v41 = vsel %vm373_vm3, 1.0, %v995_v19 }
  0x9c   : > { %v463_v32 = vrot.slane %v462_v27, 2  ;;  %v426_v34 = vadd.f32 %v425_v31, %v388_v29  ;;  %v451_v35 = vpop.f32.mrf.mxu3  ;;  %v1121_v4 = vadd.f32 %v511_v57, %v504_v47 }
  0x9d   : > { %v469_v36 = vrot.slane %v468_v30, 2  ;;  %v452_v37 = vadd.f32 %v451_v35, %v388_v29  ;;  %v507_v8 = vrot.slane %v506_v63, 2 }
  0x9e   : > { %v464_v38 = vmax.f32 %v462_v27, %v463_v32  ;;  %459 = vst [vmem:[%s352_s7] sm:$0xff] %v426_v34  ;;  %v526_v40 = vrot.slane %v426_v34, 4  ;;  %v513_v14 = vrot.slane %v1121_v4, 2  ;;  %v562_v21 = vsel %vm1098_vm1, %v426_v34, 0.0 }
  0x9f   : > { %v470_v42 = vmax.f32 %v468_v30, %v469_v36  ;;  %460 = vst [vmem:[%s352_s7 + $0x8] sm:$0xff] %v452_v37  ;;  %v532_v43 = vrot.slane %v452_v37, 4  ;;  %v563_v23 = vsel %vm1105_vm2, %v452_v37, 0.0  ;;  %v1151_v47 = vadd.f32 %v507_v8, %v506_v63 }
  0xa0   : > { %v465_v44 = vrot.slane %v464_v38, 1  ;;  %v527_v45 = vmax.f32 %v426_v34, %v526_v40  ;;  %v570_v39 = vrot.slane %v563_v23, 4  ;;  %v514_v63 = vadd.f32 %v513_v14, %v1121_v4 }
  0xa1   : > { %v471_v46 = vrot.slane %v470_v42, 1  ;;  %v533_v48 = vmax.f32 %v452_v37, %v532_v43 }
  0xa2   : > { %v1113_v49 = vmax.f32 %v464_v38, %v465_v44  ;;  %v528_v51 = vrot.slane %v527_v45, 2 }
  0xa3   : > { %v1115_v53 = vmax.f32 %v470_v42, %v471_v46  ;;  %v534_v54 = vrot.slane %v533_v48, 2  ;;  %v428_v55 = vpop.f32.mrf.mxu2 }
  0xa4   : > { %v473_v56 = vsub.f32 %v423_v20, %v1113_v49  ;;  %v529_v58 = vmax.f32 %v527_v45, %v528_v51  ;;  %v1119_v61 = vadd.f32 %v428_v55, %v393_v52  ;;  %v454_v13 = vpop.f32.mrf.mxu3 }
  0xa5   : > { %v474_v59 = vsub.f32 %v449_v22, %v1115_v53  ;;  %v535_v60 = vmax.f32 %v533_v48, %v534_v54  ;;  %v1140_v30 = vadd.f32 %v454_v13, %v393_v52 }
  0xa6   : > { %v475_v62 = vmul.f32 1.442695, %v473_v56  ;;  %v530_v0 = vrot.slane %v529_v58, 1  ;;  %v628_v7 = vand.u32 2147483647, %v1119_v61 }
  0xa7   : > { %v477_v2 = vmul.f32 1.442695, %v474_v59  ;;  %v536_v3 = vrot.slane %v535_v60, 1  ;;  %v629_v44 = vand.u32 2147483647, %v1140_v30  ;;  %v564_v59 = vrot.slane %v562_v21, 4 }
  0xa8   : > { %946 = vpow2.f32 %v475_v62  ;;  %v1123_v5 = vmax.f32 %v529_v58, %v530_v0  ;;  %v630_v12 = vsub.f32 0.0, %v628_v7  ;;  %v571_v62 = vadd.f32 %v570_v39, %v563_v23 }
  0xa9   : > { %948 = vpow2.f32 %v477_v2  ;;  %v1125_v6 = vmax.f32 %v535_v60, %v536_v3  ;;  %v631_v57 = vsub.f32 0.0, %v629_v44 }
  0xaa   : > { %v538_v9 = vsub.f32 %v426_v34, %v1123_v5  ;;  %vm584_vm4 = vcmp.ge.f32.partialorder %v426_v34, %v1123_v5  ;;  %v632_v29 = vmul.f32 1.442695, %v630_v12 }
  0xab   : > { %v586_v10 = vsel %vm584_vm4, %v1088_v24, 8  ;;  %v539_v11 = vsub.f32 %v452_v37, %v1125_v6  ;;  %vm585_vm5 = vcmp.ge.f32.partialorder %v452_v37, %v1125_v6  ;;  %v634_v12 = vmul.f32 1.442695, %v631_v57 }
  0xac   : > { %v540_v15 = vmul.f32 1.442695, %v538_v9  ;;  %v588_v18 = vrot.slane %v586_v10, 4  ;;  %v587_v20 = vsel %vm585_vm5, %v1088_v24, 8 }
  0xad   : > { %v542_v22 = vmul.f32 1.442695, %v539_v11  ;;  %v597_v26 = vrot.slane %v587_v20, 4  ;;  %v676_v24 = vld [vmem:[#allocation2 + $0x2] ss:$8 sm:$0x3] }
  0xae   : > { %v947_v27 = vpop.eup %946  ;;  %950 = vpow2.f32 %v540_v15  ;;  %vm589_vm6 = vcmp.lt.s32.totalorder %v586_v10, %v588_v18  ;;  %v679_v43 = vadd.f32 %v904_v41, %v676_v24  ;;  %v565_v15 = vadd.f32 %v564_v59, %v562_v21 }
  0xaf   : > { %v949_v31 = vpop.eup %948  ;;  %v479_v32 = vrot.slane %v947_v27, 4  ;;  %v590_v35 = vsel %vm589_vm6, %v586_v10, %v588_v18  ;;  %952 = vpow2.f32 %v542_v22  ;;  %vm598_vm7 = vcmp.lt.s32.totalorder %v587_v20, %v597_v26 }
  0xb0   : > { %v485_v34 = vrot.slane %v949_v31, 4  ;;  %v591_v36 = vrot.slane %v590_v35, 2  ;;  %v599_v37 = vsel %vm598_vm7, %v587_v20, %v597_v26  ;;  %954 = vpow2.f32 %v632_v29  ;;  %680 = vst.msk [vmem:[#allocation2 + $0x2] ss:$8 sm:$0x3] %vm1143_vm8, %v679_v43 }
  0xb1   : > { %v480_v38 = vadd.f32 %v947_v27, %v479_v32  ;;  %v600_v40 = vrot.slane %v599_v37, 2  ;;  %v572_v20 = vrot.slane %v571_v62, 2  ;;  %v566_v32 = vrot.slane %v565_v15, 2 }
  0xb2   : > { %v486_v42 = vadd.f32 %v949_v31, %v485_v34  ;;  %vm592_vm9 = vcmp.lt.s32.totalorder %v590_v35, %v591_v36  ;;  %v616_v34 = vsel %vm615_vm11, 1.0, %v995_v19  ;;  %vm700_vm6 = vcmask 7168  }
  0xb3   : > { %v481_v45 = vrot.slane %v480_v38, 2  ;;  %v593_v16 = vsel %vm592_vm9, %v590_v35, %v591_v36  ;;  %vm601_vm10 = vcmp.lt.s32.totalorder %v599_v37, %v600_v40  ;;  %v683_v36 = vld [vmem:[#allocation2 + $0x3] ss:$8 sm:$0x3]  ;;  %v573_v39 = vadd.f32 %v572_v20, %v571_v62 }
  0xb4   : > { %v951_v46 = vpop.eup %950  ;;  %v487_v48 = vrot.slane %v486_v42, 2  ;;  %v594_v50 = vrot.slane %v593_v16, 1  ;;  %v602_v51 = vsel %vm601_vm10, %v599_v37, %v600_v40 }
  0xb5   : > { %v953_v52 = vpop.eup %952  ;;  %v482_v54 = vadd.f32 %v481_v45, %v480_v38  ;;  %v544_v55 = vrot.slane %v951_v46, 4  ;;  %v603_v56 = vrot.slane %v602_v51, 1  ;;  %v515_v38 = vrot.slane %v514_v63, 1 }
  0xb6   : > { %v488_v58 = vadd.f32 %v487_v48, %v486_v42  ;;  %v550_v60 = vrot.slane %v953_v52, 4  ;;  %vm595_vm13 = vcmp.lt.s32.totalorder %v593_v16, %v594_v50  ;;  %v1157_v9 = vpop.eup %954  ;;  %v567_v45 = vadd.f32 %v566_v32, %v565_v15 }
  0xb7   : > { %v483_v0 = vrot.slane %v482_v54, 1  ;;  %v545_v2 = vadd.f32 %v951_v46, %v544_v55  ;;  %vm604_vm12 = vcmp.lt.s32.totalorder %v602_v51, %v603_v56  ;;  %v596_v14 = vsel %vm595_vm13, %v593_v16, %v594_v50 }
  0xb8   : > { %v489_v3 = vrot.slane %v488_v58, 1  ;;  %v551_v7 = vadd.f32 %v953_v52, %v550_v60  ;;  %v605_v8 = vsel %vm604_vm12, %v602_v51, %v603_v56  ;;  %v636_v26 = vadd.f32 1.0, %v1157_v9 }
  0xb9   : > { %v484_v10 = vadd.f32 %v483_v0, %v482_v54  ;;  %v546_v11 = vrot.slane %v545_v2, 2  ;;  %vm607_vm14 = vcmp.eq.s32.totalorder %v605_v8, %v500_v28  ;;  %vm606_vm0 = vcmp.eq.s32.totalorder %v596_v14, %v499_v25 }
  0xba   : > { %v490_v13 = vadd.f32 %v489_v3, %v488_v58  ;;  %v552_v18 = vrot.slane %v551_v7, 2  ;;  %v609_v22 = vsel %vm607_vm14, 1, %v994_v1  ;;  %v608_v21 = vsel %vm606_vm0, 1, %v994_v1 }
  0xbb   : > { %956 = vlog2.f32 %v484_v10  ;;  %v547_v4 = vadd.f32 %v546_v11, %v545_v2  ;;  %v610_v28 = vrot.slane %v609_v22, 7  ;;  %v509_v25 = vrot.slane %v1151_v47, 1 }
  0xbc   : > { %958 = vlog2.f32 %v490_v13  ;;  %v553_v23 = vadd.f32 %v552_v18, %v551_v7  ;;  %v639_v41 = vmul.f32 -0.5, %v1157_v9  ;;  %v620_v46 = vperm.slane %v616_v34, 0  ;;  %v662_v18 = vld [vmem:[#allocation2] ss:$8 sm:$0x3] }
  0xbd   : > { %v548_v27 = vrot.slane %v547_v4, 1  ;;  %960 = vpow2.f32 %v634_v12  ;;  %v611_v35 = vsel %vm522_vm15, %v608_v21, %v610_v28  ;;  %v516_v54 = vadd.f32 %v515_v38, %v514_v63 }
  0xbe   : > { %v554_v29 = vrot.slane %v553_v23, 1  ;;  %962 = vlog2.f32 %v636_v26  ;;  %vm612_vm1 = vcmp.ne.s32.totalorder %v611_v35, 0  ;;  %v574_v55 = vrot.slane %v573_v39, 1 }
  0xbf   : > { %v549_v31 = vadd.f32 %v548_v27, %v547_v4  ;;  %vm613_vm2 = vmand %vm373_vm3, %vm612_vm1  ;;  %v510_v57 = vadd.f32 %v509_v25, %v1151_v47  ;;  %v621_v58 = vperm.slane %v616_v34, 1  ;;  %v568_v62 = vrot.slane %v567_v45, 1  ;;  %v671_v34 = vld [vmem:[#allocation2 + $0x1] ss:$8 sm:$0x3] }
  0xc0   : > { %v555_v24 = vadd.f32 %v554_v29, %v553_v23  ;;  %v614_v42 = vsel %vm613_vm2, 1.0, %v995_v19  ;;  %v640_v19 = vadd.f32 1.0, %v639_v41  ;;  %v617_v0 = vmax.f32 %v1119_v61, 0.0 }
  0xc1   : > { %v957_v37 = vpop.eup %956  ;;  %964 = vlog2.f32 %v549_v31  ;;  %v684_v16 = vadd.f32 %v683_v36, %v614_v42  ;;  %v575_v11 = vadd.f32 %v574_v55, %v573_v39  ;;  %v618_v13 = vmax.f32 %v1140_v30, 0.0 }
  0xc2   : > { %v959_v1 = vpop.eup %958  ;;  %v492_v40 = vmul.f32 0.6931472, %v957_v37  ;;  %966 = vlog2.f32 %v555_v24  ;;  %v641_v47 = vmul.f32 %v1157_v9, %v640_v19  ;;  %v625_v15 = vmul.f32 %v621_v58, %v1140_v30 }
  0xc3   : > { %v961_v43 = vpop.eup %960  ;;  %v494_v44 = vmul.f32 0.6931472, %v959_v1  ;;  %685 = vst.msk [vmem:[#allocation2 + $0x3] ss:$8 sm:$0x3] %vm1143_vm8, %v684_v16  ;;  %v624_v26 = vmul.f32 %v620_v46, %v1119_v61  ;;  %v569_v30 = vadd.f32 %v568_v62, %v567_v45 }
  0xc4   : > { %v645_v48 = vadd.f32 1.0, %v961_v43  ;;  %v648_v50 = vmul.f32 -0.5, %v961_v43  ;;  %v495_v51 = vadd.f32 %v492_v40, %v1113_v49  ;;  %v963_v56 = vpop.eup %962  ;;  %v651_v63 = vand.u32 2147483647, %v961_v43 }
  0xc5   : > { %v496_v52 = vadd.f32 %v494_v44, %v1115_v53  ;;  %v642_v53 = vand.u32 2147483647, %v1157_v9  ;;  %v638_v12 = vmul.f32 0.6931472, %v963_v56  ;;  %v627_v21 = vsub.f32 %v618_v13, %v625_v15 }
  0xc6   : > { %968 = vlog2.f32 %v645_v48  ;;  %v649_v2 = vadd.f32 1.0, %v648_v50  ;;  %v517_v7 = vsub.f32 %v495_v51, %v510_v57  ;;  %vm652_vm5 = vcmp.lt.f32.partialorder %v651_v63, 0.0004427343  ;;  %v688_v1 = vld [vmem:[#allocation2 + $0x4] ss:$8 sm:$0x3] }
  0xc7   : > { %v965_v59 = vpop.eup %964  ;;  %v518_v60 = vsub.f32 %v496_v52, %v516_v54  ;;  %vm1189_vm4 = vcmp.lt.f32.partialorder %v642_v53, 0.0004427343  ;;  %v626_v61 = vsub.f32 %v617_v0, %v624_v26 }
  0xc8   : > { %v967_v49 = vpop.eup %966  ;;  %v557_v3 = vmul.f32 0.6931472, %v965_v59  ;;  %v650_v22 = vmul.f32 %v961_v43, %v649_v2  ;;  %v644_v32 = vsel %vm1189_vm4, %v641_v47, %v638_v12 }
  0xc9   : > { %v521_v8 = vrot.slane %v518_v60, 7  ;;  %v559_v10 = vmul.f32 0.6931472, %v967_v49  ;;  %v654_v37 = vadd.f32 %v644_v32, %v626_v61 }
  0xca   : > { %v560_v20 = vadd.f32 %v557_v3, %v1123_v5 }
  0xcb   : > { %v561_v4 = vadd.f32 %v559_v10, %v1125_v6  ;;  %v523_v14 = vsel %vm522_vm15, %v517_v7, %v521_v8 }
  0xcc   : > { %v969_v23 = vpop.eup %968  ;;  %v525_v9 = vsel %vm373_vm3, %v523_v14, 0.0  ;;  %v576_v6 = vsub.f32 %v560_v20, %v569_v30 }
  0xcd   : > { %v577_v28 = vsub.f32 %v561_v4, %v575_v11  ;;  %v647_v29 = vmul.f32 0.6931472, %v969_v23  ;;  %v663_v5 = vadd.f32 %v662_v18, %v525_v9 }
  0xcf   : > { %v580_v31 = vrot.slane %v577_v28, 7  ;;  %v653_v35 = vsel %vm652_vm5, %v650_v22, %v647_v29  ;;  %668 = vst.msk [vmem:[#allocation2] ss:$8 sm:$0x3] %vm1143_vm8, %v663_v5 }
  0xd0   : > { %v655_v24 = vadd.f32 %v653_v35, %v627_v21 }
  0xd1   : > { %v581_v36 = vsel %vm522_vm15, %v576_v6, %v580_v31 }
  0xd2   : > { %v583_v25 = vsel %vm373_vm3, %v581_v36, 0.0  ;;  %v658_v38 = vrot.slane %v655_v24, 7 }
  0xd3   : > { %v672_v39 = vadd.f32 %v671_v34, %v583_v25 }
  0xd4   : > { %v659_v40 = vsel %vm522_vm15, %v654_v37, %v658_v38 }
  0xd5   : > { %v661_v41 = vsel %vm373_vm3, %v659_v40, 0.0  ;;  %673 = vst.msk [vmem:[#allocation2 + $0x1] ss:$8 sm:$0x3] %vm1143_vm8, %v672_v39 }
  0xd6   : > { %v689_v42 = vadd.f32 %v688_v1, %v661_v41 }
  0xd8   : > { %690 = vst.msk [vmem:[#allocation2 + $0x4] ss:$8 sm:$0x3] %vm1143_vm8, %v689_v42 }
  0xdf   : > { %v695_v43 = vld [vmem:[#allocation2] sm:$0xff]  ;;  %v696_v44 = vld [vmem:[#allocation2 + $0x8] sm:$0xff] }
  0xe0   : > { %v697_v45 = vadd.f32 %v696_v44, %v695_v43 }
  0xe2   : > { %698 = vadd.xlane.f32.xlu1 %v697_v45 }
 0x155   : > { %v699_v16 = vpop.xlane.xlu1 %698 }
 0x156   : > { %701 = vst.msk [vmem:[%s357_s11] sm:$0xff] %vm700_vm6, %v699_v16 }
 0x157 PF: > { %s17_s23 = sadd.s32 1, %s992_s23   ;;  %s1237_s21 = smov %s988_s22 }
 0x158   : > { %p14_p5 = scmp.ge.s32.totalorder %s17_s23, 4   ;;  %s1238_s22 = smov %s1240_s24 }
 0x15a   :  { %16 = sbr.rel (!%p14_p5) target bundleno = 2 (0x2), region = 105 }

</bundles_post_ra>
